<compile_context>
chip_gen: v7x
topology: tpu7x:2x2x1
jax: 0.10.0
libtpu: 0.0.40
codegen_flags: <defaults>
</compile_context>

<pallas_src>
import functools

import jax
import jax.numpy as jnp
from jax.experimental import pallas as pl
from jax.experimental.pallas import tpu as pltpu

KSIZE = 7
PAD = 3  # kernel_size=7 -> padding=3


def _channel_attention_kernel(band_ref, x_ref, o_ref, pad_ref, *, C, H, W, Bt):
    # band_ref: (2, 7, W, W) f32 VMEM banded weights (same block every step -> resident)
    # x_ref   : (Bt, C, H, W) input tile
    # o_ref   : (Bt, 1, H, W) output tile
    # pad_ref : (2, H + 2*PAD, W) f32 scratch: height-padded sum / max planes

    # Zero only the 2*PAD border rows.  Done every grid step (cost: 12*W element
    # stores) instead of once under pl.when(program_id==0), because with the
    # "parallel" batch axis the second TensorCore never sees program_id==0 and
    # would read stale border rows.  The interior is fully overwritten below.
    zb = jnp.zeros((PAD, W), jnp.float32)
    for ch in range(2):
        pad_ref[ch, :PAD, :] = zb
        pad_ref[ch, PAD + H:, :] = zb

    for bi in range(Bt):
        # Single pass over channels: accumulate sum and max one (H, W) plane at
        # a time (no whole-(C,H,W) f32 temporary; bounded live ranges).
        x0 = x_ref[bi, 0].astype(jnp.float32)

        def body(c, carry, _bi=bi):
            s, m = carry
            xc = x_ref[_bi, c].astype(jnp.float32)
            return s + xc, jnp.maximum(m, xc)

        s, m = jax.lax.fori_loop(1, C, body, (x0, x0))

        # 1/C mean scale is folded into band_ref[0], so the raw channel sum is stored.
        pad_ref[0, PAD:PAD + H, :] = s
        pad_ref[1, PAD:PAD + H, :] = m

        # 7x7 "same" conv: width contraction as banded (W, W) matmuls on the MXU;
        # only the 14 kh row offsets remain as sublane-shifted reads.
        acc = jnp.zeros((H, W), jnp.float32)
        for ch in range(2):
            for kh in range(KSIZE):
                acc = acc + jnp.dot(
                    pad_ref[ch, kh:kh + H, :],
                    band_ref[ch, kh],
                    preferred_element_type=jnp.float32,
                )

        o_ref[bi, 0] = jax.nn.sigmoid(acc).astype(o_ref.dtype)


def _build_band(conv_weight, C, W):
    """(1, 2, 7, 7) conv weight -> (2, 7, W, W) banded width-contraction matrices.

    band[ch, kh, i, w] = weight[ch, kh, i - w + PAD] when 0 <= i - w + PAD < 7
    else 0, so that out[h, :] += pad_plane[h + kh, :] @ band[ch, kh].  Width
    zero-padding is implicit in the band; the 1/C mean scale is folded into the
    avg channel (ch = 0).
    """
    wt = conv_weight[0].astype(jnp.float32)                   # (2, 7, 7)
    i_in = jnp.arange(W)[:, None]                             # input column
    w_out = jnp.arange(W)[None, :]                            # output column
    kw_idx = i_in - w_out + PAD                                # (W, W)
    valid = (kw_idx >= 0) & (kw_idx < KSIZE)
    band = jnp.where(valid[None, None],
                     wt[:, :, jnp.clip(kw_idx, 0, KSIZE - 1)], 0.0)
    return band.at[0].multiply(1.0 / C)                        # (2, 7, W, W)


def _pick_batch_tile(B, per_image_bytes, budget_bytes=4 << 20, max_tile=8):
    """Largest divisor of B (<= max_tile, within the VMEM budget) that still
    leaves >= 2 grid steps so both v7x TensorCores get work."""
    bt = 1
    for d in range(1, B + 1):
        if B % d:
            continue
        if d > max_tile or d * per_image_bytes > budget_bytes:
            continue
        if B // d < 2 and B >= 2:
            continue
        bt = d
    return bt


def channel_attention(x, conv_weight):
    """x: (B, C, H, W).  conv_weight: (1, 2, 7, 7), bias-free.
    Returns sigmoid(conv2d(cat([mean_c(x), max_c(x)]), weight, pad=3)) of shape (B, 1, H, W)."""
    B, C, H, W = x.shape
    assert conv_weight.shape == (1, 2, KSIZE, KSIZE)

    band = _build_band(conv_weight, C, W)

    per_image = C * H * W * x.dtype.itemsize
    Bt = _pick_batch_tile(B, per_image)
    grid = (B // Bt,)

    # Explicit VMEM budget: double-buffered x/out blocks + resident band + scratch,
    # with 2x headroom (v5e default scoped limit is 16 MiB; v7x physical is 64 MiB).
    # TODO(synk): for very large C*H*W per image (e.g. C>=64 at 256x256 f32 on v7x),
    # add an inner "arbitrary" C grid axis with sum/max VMEM accumulators instead of
    # one whole-(C,H,W) block.
    x_block = Bt * per_image
    out_block = Bt * H * W * x.dtype.itemsize
    band_bytes = 2 * KSIZE * W * W * 4
    scratch_bytes = 2 * (H + 2 * PAD) * W * 4
    vmem_need = 2 * (x_block + out_block) + band_bytes + scratch_bytes
    vmem_limit = int(min(max(2 * vmem_need, 16 * 1024 * 1024), 48 * 1024 * 1024))

    kernel = functools.partial(_channel_attention_kernel, C=C, H=H, W=W, Bt=Bt)

    # TODO(synk): for W < 128, pack several images along the lane axis with a
    # block-diagonal band (kron(I_Bt, band)) so reductions and output stores are
    # lane-dense; skipped here to avoid full-tensor transposes in the wrapper.
    return pl.pallas_call(
        kernel,
        out_shape=jax.ShapeDtypeStruct((B, 1, H, W), x.dtype),
        grid_spec=pltpu.PrefetchScalarGridSpec(
            num_scalar_prefetch=0,
            grid=grid,
            in_specs=[
                pl.BlockSpec((2, KSIZE, W, W), lambda b: (0, 0, 0, 0)),  # band (resident)
                pl.BlockSpec((Bt, C, H, W), lambda b: (b, 0, 0, 0)),     # x tile
            ],
            out_specs=pl.BlockSpec((Bt, 1, H, W), lambda b: (b, 0, 0, 0)),
            scratch_shapes=[
                pltpu.VMEM((2, H + 2 * PAD, W), jnp.float32),            # padded sum/max planes
            ],
        ),
        compiler_params=pltpu.CompilerParams(
            dimension_semantics=("parallel",),
            vmem_limit_bytes=vmem_limit,
        ),
    )(band, x)


def _reference(x, conv_weight):
    avg = jnp.mean(x, axis=1, keepdims=True)
    mx = jnp.max(x, axis=1, keepdims=True)
    cat = jnp.concatenate([avg, mx], axis=1)                # (B, 2, H, W)
    y = jax.lax.conv_general_dilated(
        cat, conv_weight,
        window_strides=(1, 1), padding=((PAD, PAD), (PAD, PAD)),
        dimension_numbers=("NCHW", "OIHW", "NCHW"),
        precision=jax.lax.Precision.HIGHEST,
    )
    return jax.nn.sigmoid(y)


if __name__ == "__main__":
    key = jax.random.PRNGKey(0)
    kx, kw = jax.random.split(key)

    B, C, H, W = 2, 4, 16, 16
    x = jax.random.normal(kx, (B, C, H, W), dtype=jnp.float32)

    # Deterministic Conv2d(2, 1, 7, bias=False) weight init (kaiming-uniform-ish scale).
    fan_in = 2 * KSIZE * KSIZE
    bound = 1.0 / (fan_in ** 0.5)
    conv_weight = jax.random.uniform(
        kw, (1, 2, KSIZE, KSIZE), dtype=jnp.float32, minval=-bound, maxval=bound)

    out = jax.jit(channel_attention)(x, conv_weight)
    out = jax.block_until_ready(out)

    ref = _reference(x, conv_weight)
    assert out.shape == (B, 1, H, W)
    # The MXU may run f32 matmuls via reduced-precision bf16 passes depending on the
    # generation; 2e-3 on sigmoid outputs in (0, 1) is still ~2 orders of magnitude
    # below any semantic error (misaligned taps / wrong padding / missing 1/C).
    assert jnp.allclose(out, ref, atol=2e-3, rtol=2e-3), "mismatch vs JAX reference"

    print("KERNEL_OK")
</pallas_src>

<mosaic_0001>
module attributes {stable_mosaic.version = 11 : i64} {
  func.func @_channel_attention_kernel(%arg0: i32, %arg1: memref<2x7x16x16xf32, #tpu.memory_space<vmem>>, %arg2: memref<1x4x16x16xf32, #tpu.memory_space<vmem>>, %arg3: memref<1x1x16x16xf32, #tpu.memory_space<vmem>>, %arg4: memref<2x22x16xf32, #tpu.memory_space<vmem>>) attributes {dimension_semantics = [#tpu.dimension_semantics<parallel>], iteration_bounds = array<i64: 2>, scalar_prefetch = 0 : i64, scratch_operands = 1 : i64, tpu.core_type = #tpu.core_type<tc>, window_params = [{pipeline_mode = #tpu.pipeline_mode<synchronous>, transform_indices = @transform_0, window_bounds = array<i64: 2, 7, 16, 16>}, {transform_indices = @transform_1, window_bounds = array<i64: 1, 4, 16, 16>}, {transform_indices = @transform_2, window_bounds = array<i64: 1, 1, 16, 16>}]} {
    %cst = arith.constant 0.000000e+00 : f32
    %0 = vector.broadcast %cst : f32 to vector<3x16xf32>
    %c0 = arith.constant 0 : index
    %c0_0 = arith.constant 0 : index
    %c0_1 = arith.constant 0 : index
    %1 = vector.load %arg4[%c0, %c0_0, %c0_1] : memref<2x22x16xf32, #tpu.memory_space<vmem>>, vector<1x3x16xf32>
    %2 = vector.shape_cast %1 : vector<1x3x16xf32> to vector<3x16xf32>
    %3 = vector.shape_cast %0 : vector<3x16xf32> to vector<1x3x16xf32>
    tpu.vector_store %arg4[%c0, %c0_0, %c0_1], %3 {strides = array<i32>} : memref<2x22x16xf32, #tpu.memory_space<vmem>>, vector<1x3x16xf32>,
    %c0_2 = arith.constant 0 : index
    %c19 = arith.constant 19 : index
    %c0_3 = arith.constant 0 : index
    %4 = vector.load %arg4[%c0_2, %c19, %c0_3] : memref<2x22x16xf32, #tpu.memory_space<vmem>>, vector<1x3x16xf32>
    %5 = vector.shape_cast %4 : vector<1x3x16xf32> to vector<3x16xf32>
    %6 = vector.shape_cast %0 : vector<3x16xf32> to vector<1x3x16xf32>
    tpu.vector_store %arg4[%c0_2, %c19, %c0_3], %6 {strides = array<i32>} : memref<2x22x16xf32, #tpu.memory_space<vmem>>, vector<1x3x16xf32>,
    %c1 = arith.constant 1 : index
    %c0_4 = arith.constant 0 : index
    %c0_5 = arith.constant 0 : index
    %7 = vector.load %arg4[%c1, %c0_4, %c0_5] : memref<2x22x16xf32, #tpu.memory_space<vmem>>, vector<1x3x16xf32>
    %8 = vector.shape_cast %7 : vector<1x3x16xf32> to vector<3x16xf32>
    %9 = vector.shape_cast %0 : vector<3x16xf32> to vector<1x3x16xf32>
    tpu.vector_store %arg4[%c1, %c0_4, %c0_5], %9 {strides = array<i32>} : memref<2x22x16xf32, #tpu.memory_space<vmem>>, vector<1x3x16xf32>,
    %c1_6 = arith.constant 1 : index
    %c19_7 = arith.constant 19 : index
    %c0_8 = arith.constant 0 : index
    %10 = vector.load %arg4[%c1_6, %c19_7, %c0_8] : memref<2x22x16xf32, #tpu.memory_space<vmem>>, vector<1x3x16xf32>
    %11 = vector.shape_cast %10 : vector<1x3x16xf32> to vector<3x16xf32>
    %12 = vector.shape_cast %0 : vector<3x16xf32> to vector<1x3x16xf32>
    tpu.vector_store %arg4[%c1_6, %c19_7, %c0_8], %12 {strides = array<i32>} : memref<2x22x16xf32, #tpu.memory_space<vmem>>, vector<1x3x16xf32>,
    %c0_9 = arith.constant 0 : index
    %c0_10 = arith.constant 0 : index
    %c0_11 = arith.constant 0 : index
    %c0_12 = arith.constant 0 : index
    %13 = vector.load %arg2[%c0_9, %c0_10, %c0_11, %c0_12] : memref<1x4x16x16xf32, #tpu.memory_space<vmem>>, vector<1x1x16x16xf32>
    %14 = vector.shape_cast %13 : vector<1x1x16x16xf32> to vector<16x16xf32>
    %c1_i32 = arith.constant 1 : i32
    %c3_i32 = arith.constant 3 : i32
    %15 = arith.addi %c1_i32, %c3_i32 : i32
    %c1_i32_13 = arith.constant 1 : i32
    %16:2 = scf.for %arg5 = %c1_i32 to %15 step %c1_i32_13 iter_args(%arg6 = %14, %arg7 = %14) -> (vector<16x16xf32>, vector<16x16xf32>)  : i32 {
      %c0_134 = arith.constant 0 : index
      %116 = arith.index_cast %arg5 : i32 to index
      %c0_135 = arith.constant 0 : index
      %c0_136 = arith.constant 0 : index
      %117 = vector.load %arg2[%c0_134, %116, %c0_135, %c0_136] : memref<1x4x16x16xf32, #tpu.memory_space<vmem>>, vector<1x1x16x16xf32>
      %118 = vector.shape_cast %117 : vector<1x1x16x16xf32> to vector<16x16xf32>
      %119 = arith.addf %arg6, %118 : vector<16x16xf32>
      %120 = arith.maximumf %arg7, %118 : vector<16x16xf32>
      scf.yield %119, %120 : vector<16x16xf32>, vector<16x16xf32>
    }
    %c3_i32_14 = arith.constant 3 : i32
    %c0_15 = arith.constant 0 : index
    %c3 = arith.constant 3 : index
    %c0_16 = arith.constant 0 : index
    %17 = vector.load %arg4[%c0_15, %c3, %c0_16] : memref<2x22x16xf32, #tpu.memory_space<vmem>>, vector<1x16x16xf32>
    %18 = vector.shape_cast %17 : vector<1x16x16xf32> to vector<16x16xf32>
    %19 = vector.shape_cast %16#0 : vector<16x16xf32> to vector<1x16x16xf32>
    tpu.vector_store %arg4[%c0_15, %c3, %c0_16], %19 {strides = array<i32>} : memref<2x22x16xf32, #tpu.memory_space<vmem>>, vector<1x16x16xf32>,
    %c1_17 = arith.constant 1 : index
    %c3_18 = arith.constant 3 : index
    %c0_19 = arith.constant 0 : index
    %20 = vector.load %arg4[%c1_17, %c3_18, %c0_19] : memref<2x22x16xf32, #tpu.memory_space<vmem>>, vector<1x16x16xf32>
    %21 = vector.shape_cast %20 : vector<1x16x16xf32> to vector<16x16xf32>
    %22 = vector.shape_cast %16#1 : vector<16x16xf32> to vector<1x16x16xf32>
    tpu.vector_store %arg4[%c1_17, %c3_18, %c0_19], %22 {strides = array<i32>} : memref<2x22x16xf32, #tpu.memory_space<vmem>>, vector<1x16x16xf32>,
    %cst_20 = arith.constant 0.000000e+00 : f32
    %23 = vector.broadcast %cst_20 : f32 to vector<16x16xf32>
    %c0_21 = arith.constant 0 : index
    %c0_22 = arith.constant 0 : index
    %c0_23 = arith.constant 0 : index
    %24 = vector.load %arg4[%c0_21, %c0_22, %c0_23] : memref<2x22x16xf32, #tpu.memory_space<vmem>>, vector<1x16x16xf32>
    %25 = vector.shape_cast %24 : vector<1x16x16xf32> to vector<16x16xf32>
    %c0_24 = arith.constant 0 : index
    %c0_25 = arith.constant 0 : index
    %c0_26 = arith.constant 0 : index
    %c0_27 = arith.constant 0 : index
    %26 = vector.load %arg1[%c0_24, %c0_25, %c0_26, %c0_27] : memref<2x7x16x16xf32, #tpu.memory_space<vmem>>, vector<1x1x16x16xf32>
    %27 = vector.shape_cast %26 : vector<1x1x16x16xf32> to vector<16x16xf32>
    %cst_28 = arith.constant dense<0.000000e+00> : vector<16x16xf32>
    %28 = tpu.matmul %25, %27, %cst_28 {dimension_numbers = #tpu.dot_dimension_numbers<[1], [0], [0], [1], [0, 0, 1, 1], [], []>} : vector<16x16xf32>, vector<16x16xf32>, vector<16x16xf32> -> vector<16x16xf32>
    %29 = arith.addf %23, %28 : vector<16x16xf32>
    %c0_29 = arith.constant 0 : index
    %c1_30 = arith.constant 1 : index
    %c0_31 = arith.constant 0 : index
    %30 = vector.load %arg4[%c0_29, %c1_30, %c0_31] : memref<2x22x16xf32, #tpu.memory_space<vmem>>, vector<1x16x16xf32>
    %31 = vector.shape_cast %30 : vector<1x16x16xf32> to vector<16x16xf32>
    %c0_32 = arith.constant 0 : index
    %c1_33 = arith.constant 1 : index
    %c0_34 = arith.constant 0 : index
    %c0_35 = arith.constant 0 : index
    %32 = vector.load %arg1[%c0_32, %c1_33, %c0_34, %c0_35] : memref<2x7x16x16xf32, #tpu.memory_space<vmem>>, vector<1x1x16x16xf32>
    %33 = vector.shape_cast %32 : vector<1x1x16x16xf32> to vector<16x16xf32>
    %cst_36 = arith.constant dense<0.000000e+00> : vector<16x16xf32>
    %34 = tpu.matmul %31, %33, %cst_36 {dimension_numbers = #tpu.dot_dimension_numbers<[1], [0], [0], [1], [0, 0, 1, 1], [], []>} : vector<16x16xf32>, vector<16x16xf32>, vector<16x16xf32> -> vector<16x16xf32>
    %35 = arith.addf %29, %34 : vector<16x16xf32>
    %c0_37 = arith.constant 0 : index
    %c2 = arith.constant 2 : index
    %c0_38 = arith.constant 0 : index
    %36 = vector.load %arg4[%c0_37, %c2, %c0_38] : memref<2x22x16xf32, #tpu.memory_space<vmem>>, vector<1x16x16xf32>
    %37 = vector.shape_cast %36 : vector<1x16x16xf32> to vector<16x16xf32>
    %c0_39 = arith.constant 0 : index
    %c2_40 = arith.constant 2 : index
    %c0_41 = arith.constant 0 : index
    %c0_42 = arith.constant 0 : index
    %38 = vector.load %arg1[%c0_39, %c2_40, %c0_41, %c0_42] : memref<2x7x16x16xf32, #tpu.memory_space<vmem>>, vector<1x1x16x16xf32>
    %39 = vector.shape_cast %38 : vector<1x1x16x16xf32> to vector<16x16xf32>
    %cst_43 = arith.constant dense<0.000000e+00> : vector<16x16xf32>
    %40 = tpu.matmul %37, %39, %cst_43 {dimension_numbers = #tpu.dot_dimension_numbers<[1], [0], [0], [1], [0, 0, 1, 1], [], []>} : vector<16x16xf32>, vector<16x16xf32>, vector<16x16xf32> -> vector<16x16xf32>
    %41 = arith.addf %35, %40 : vector<16x16xf32>
    %c0_44 = arith.constant 0 : index
    %c3_45 = arith.constant 3 : index
    %c0_46 = arith.constant 0 : index
    %42 = vector.load %arg4[%c0_44, %c3_45, %c0_46] : memref<2x22x16xf32, #tpu.memory_space<vmem>>, vector<1x16x16xf32>
    %43 = vector.shape_cast %42 : vector<1x16x16xf32> to vector<16x16xf32>
    %c0_47 = arith.constant 0 : index
    %c3_48 = arith.constant 3 : index
    %c0_49 = arith.constant 0 : index
    %c0_50 = arith.constant 0 : index
    %44 = vector.load %arg1[%c0_47, %c3_48, %c0_49, %c0_50] : memref<2x7x16x16xf32, #tpu.memory_space<vmem>>, vector<1x1x16x16xf32>
    %45 = vector.shape_cast %44 : vector<1x1x16x16xf32> to vector<16x16xf32>
    %cst_51 = arith.constant dense<0.000000e+00> : vector<16x16xf32>
    %46 = tpu.matmul %43, %45, %cst_51 {dimension_numbers = #tpu.dot_dimension_numbers<[1], [0], [0], [1], [0, 0, 1, 1], [], []>} : vector<16x16xf32>, vector<16x16xf32>, vector<16x16xf32> -> vector<16x16xf32>
    %47 = arith.addf %41, %46 : vector<16x16xf32>
    %c0_52 = arith.constant 0 : index
    %c4 = arith.constant 4 : index
    %c0_53 = arith.constant 0 : index
    %48 = vector.load %arg4[%c0_52, %c4, %c0_53] : memref<2x22x16xf32, #tpu.memory_space<vmem>>, vector<1x16x16xf32>
    %49 = vector.shape_cast %48 : vector<1x16x16xf32> to vector<16x16xf32>
    %c0_54 = arith.constant 0 : index
    %c4_55 = arith.constant 4 : index
    %c0_56 = arith.constant 0 : index
    %c0_57 = arith.constant 0 : index
    %50 = vector.load %arg1[%c0_54, %c4_55, %c0_56, %c0_57] : memref<2x7x16x16xf32, #tpu.memory_space<vmem>>, vector<1x1x16x16xf32>
    %51 = vector.shape_cast %50 : vector<1x1x16x16xf32> to vector<16x16xf32>
    %cst_58 = arith.constant dense<0.000000e+00> : vector<16x16xf32>
    %52 = tpu.matmul %49, %51, %cst_58 {dimension_numbers = #tpu.dot_dimension_numbers<[1], [0], [0], [1], [0, 0, 1, 1], [], []>} : vector<16x16xf32>, vector<16x16xf32>, vector<16x16xf32> -> vector<16x16xf32>
    %53 = arith.addf %47, %52 : vector<16x16xf32>
    %c0_59 = arith.constant 0 : index
    %c5 = arith.constant 5 : index
    %c0_60 = arith.constant 0 : index
    %54 = vector.load %arg4[%c0_59, %c5, %c0_60] : memref<2x22x16xf32, #tpu.memory_space<vmem>>, vector<1x16x16xf32>
    %55 = vector.shape_cast %54 : vector<1x16x16xf32> to vector<16x16xf32>
    %c0_61 = arith.constant 0 : index
    %c5_62 = arith.constant 5 : index
    %c0_63 = arith.constant 0 : index
    %c0_64 = arith.constant 0 : index
    %56 = vector.load %arg1[%c0_61, %c5_62, %c0_63, %c0_64] : memref<2x7x16x16xf32, #tpu.memory_space<vmem>>, vector<1x1x16x16xf32>
    %57 = vector.shape_cast %56 : vector<1x1x16x16xf32> to vector<16x16xf32>
    %cst_65 = arith.constant dense<0.000000e+00> : vector<16x16xf32>
    %58 = tpu.matmul %55, %57, %cst_65 {dimension_numbers = #tpu.dot_dimension_numbers<[1], [0], [0], [1], [0, 0, 1, 1], [], []>} : vector<16x16xf32>, vector<16x16xf32>, vector<16x16xf32> -> vector<16x16xf32>
    %59 = arith.addf %53, %58 : vector<16x16xf32>
    %c0_66 = arith.constant 0 : index
    %c6 = arith.constant 6 : index
    %c0_67 = arith.constant 0 : index
    %60 = vector.load %arg4[%c0_66, %c6, %c0_67] : memref<2x22x16xf32, #tpu.memory_space<vmem>>, vector<1x16x16xf32>
    %61 = vector.shape_cast %60 : vector<1x16x16xf32> to vector<16x16xf32>
    %c0_68 = arith.constant 0 : index
    %c6_69 = arith.constant 6 : index
    %c0_70 = arith.constant 0 : index
    %c0_71 = arith.constant 0 : index
    %62 = vector.load %arg1[%c0_68, %c6_69, %c0_70, %c0_71] : memref<2x7x16x16xf32, #tpu.memory_space<vmem>>, vector<1x1x16x16xf32>
    %63 = vector.shape_cast %62 : vector<1x1x16x16xf32> to vector<16x16xf32>
    %cst_72 = arith.constant dense<0.000000e+00> : vector<16x16xf32>
    %64 = tpu.matmul %61, %63, %cst_72 {dimension_numbers = #tpu.dot_dimension_numbers<[1], [0], [0], [1], [0, 0, 1, 1], [], []>} : vector<16x16xf32>, vector<16x16xf32>, vector<16x16xf32> -> vector<16x16xf32>
    %65 = arith.addf %59, %64 : vector<16x16xf32>
    %c1_73 = arith.constant 1 : index
    %c0_74 = arith.constant 0 : index
    %c0_75 = arith.constant 0 : index
    %66 = vector.load %arg4[%c1_73, %c0_74, %c0_75] : memref<2x22x16xf32, #tpu.memory_space<vmem>>, vector<1x16x16xf32>
    %67 = vector.shape_cast %66 : vector<1x16x16xf32> to vector<16x16xf32>
    %c1_76 = arith.constant 1 : index
    %c0_77 = arith.constant 0 : index
    %c0_78 = arith.constant 0 : index
    %c0_79 = arith.constant 0 : index
    %68 = vector.load %arg1[%c1_76, %c0_77, %c0_78, %c0_79] : memref<2x7x16x16xf32, #tpu.memory_space<vmem>>, vector<1x1x16x16xf32>
    %69 = vector.shape_cast %68 : vector<1x1x16x16xf32> to vector<16x16xf32>
    %cst_80 = arith.constant dense<0.000000e+00> : vector<16x16xf32>
    %70 = tpu.matmul %67, %69, %cst_80 {dimension_numbers = #tpu.dot_dimension_numbers<[1], [0], [0], [1], [0, 0, 1, 1], [], []>} : vector<16x16xf32>, vector<16x16xf32>, vector<16x16xf32> -> vector<16x16xf32>
    %71 = arith.addf %65, %70 : vector<16x16xf32>
    %c1_81 = arith.constant 1 : index
    %c1_82 = arith.constant 1 : index
    %c0_83 = arith.constant 0 : index
    %72 = vector.load %arg4[%c1_81, %c1_82, %c0_83] : memref<2x22x16xf32, #tpu.memory_space<vmem>>, vector<1x16x16xf32>
    %73 = vector.shape_cast %72 : vector<1x16x16xf32> to vector<16x16xf32>
    %c1_84 = arith.constant 1 : index
    %c1_85 = arith.constant 1 : index
    %c0_86 = arith.constant 0 : index
    %c0_87 = arith.constant 0 : index
    %74 = vector.load %arg1[%c1_84, %c1_85, %c0_86, %c0_87] : memref<2x7x16x16xf32, #tpu.memory_space<vmem>>, vector<1x1x16x16xf32>
    %75 = vector.shape_cast %74 : vector<1x1x16x16xf32> to vector<16x16xf32>
    %cst_88 = arith.constant dense<0.000000e+00> : vector<16x16xf32>
    %76 = tpu.matmul %73, %75, %cst_88 {dimension_numbers = #tpu.dot_dimension_numbers<[1], [0], [0], [1], [0, 0, 1, 1], [], []>} : vector<16x16xf32>, vector<16x16xf32>, vector<16x16xf32> -> vector<16x16xf32>
    %77 = arith.addf %71, %76 : vector<16x16xf32>
    %c1_89 = arith.constant 1 : index
    %c2_90 = arith.constant 2 : index
    %c0_91 = arith.constant 0 : index
    %78 = vector.load %arg4[%c1_89, %c2_90, %c0_91] : memref<2x22x16xf32, #tpu.memory_space<vmem>>, vector<1x16x16xf32>
    %79 = vector.shape_cast %78 : vector<1x16x16xf32> to vector<16x16xf32>
    %c1_92 = arith.constant 1 : index
    %c2_93 = arith.constant 2 : index
    %c0_94 = arith.constant 0 : index
    %c0_95 = arith.constant 0 : index
    %80 = vector.load %arg1[%c1_92, %c2_93, %c0_94, %c0_95] : memref<2x7x16x16xf32, #tpu.memory_space<vmem>>, vector<1x1x16x16xf32>
    %81 = vector.shape_cast %80 : vector<1x1x16x16xf32> to vector<16x16xf32>
    %cst_96 = arith.constant dense<0.000000e+00> : vector<16x16xf32>
    %82 = tpu.matmul %79, %81, %cst_96 {dimension_numbers = #tpu.dot_dimension_numbers<[1], [0], [0], [1], [0, 0, 1, 1], [], []>} : vector<16x16xf32>, vector<16x16xf32>, vector<16x16xf32> -> vector<16x16xf32>
    %83 = arith.addf %77, %82 : vector<16x16xf32>
    %c1_97 = arith.constant 1 : index
    %c3_98 = arith.constant 3 : index
    %c0_99 = arith.constant 0 : index
    %84 = vector.load %arg4[%c1_97, %c3_98, %c0_99] : memref<2x22x16xf32, #tpu.memory_space<vmem>>, vector<1x16x16xf32>
    %85 = vector.shape_cast %84 : vector<1x16x16xf32> to vector<16x16xf32>
    %c1_100 = arith.constant 1 : index
    %c3_101 = arith.constant 3 : index
    %c0_102 = arith.constant 0 : index
    %c0_103 = arith.constant 0 : index
    %86 = vector.load %arg1[%c1_100, %c3_101, %c0_102, %c0_103] : memref<2x7x16x16xf32, #tpu.memory_space<vmem>>, vector<1x1x16x16xf32>
    %87 = vector.shape_cast %86 : vector<1x1x16x16xf32> to vector<16x16xf32>
    %cst_104 = arith.constant dense<0.000000e+00> : vector<16x16xf32>
    %88 = tpu.matmul %85, %87, %cst_104 {dimension_numbers = #tpu.dot_dimension_numbers<[1], [0], [0], [1], [0, 0, 1, 1], [], []>} : vector<16x16xf32>, vector<16x16xf32>, vector<16x16xf32> -> vector<16x16xf32>
    %89 = arith.addf %83, %88 : vector<16x16xf32>
    %c1_105 = arith.constant 1 : index
    %c4_106 = arith.constant 4 : index
    %c0_107 = arith.constant 0 : index
    %90 = vector.load %arg4[%c1_105, %c4_106, %c0_107] : memref<2x22x16xf32, #tpu.memory_space<vmem>>, vector<1x16x16xf32>
    %91 = vector.shape_cast %90 : vector<1x16x16xf32> to vector<16x16xf32>
    %c1_108 = arith.constant 1 : index
    %c4_109 = arith.constant 4 : index
    %c0_110 = arith.constant 0 : index
    %c0_111 = arith.constant 0 : index
    %92 = vector.load %arg1[%c1_108, %c4_109, %c0_110, %c0_111] : memref<2x7x16x16xf32, #tpu.memory_space<vmem>>, vector<1x1x16x16xf32>
    %93 = vector.shape_cast %92 : vector<1x1x16x16xf32> to vector<16x16xf32>
    %cst_112 = arith.constant dense<0.000000e+00> : vector<16x16xf32>
    %94 = tpu.matmul %91, %93, %cst_112 {dimension_numbers = #tpu.dot_dimension_numbers<[1], [0], [0], [1], [0, 0, 1, 1], [], []>} : vector<16x16xf32>, vector<16x16xf32>, vector<16x16xf32> -> vector<16x16xf32>
    %95 = arith.addf %89, %94 : vector<16x16xf32>
    %c1_113 = arith.constant 1 : index
    %c5_114 = arith.constant 5 : index
    %c0_115 = arith.constant 0 : index
    %96 = vector.load %arg4[%c1_113, %c5_114, %c0_115] : memref<2x22x16xf32, #tpu.memory_space<vmem>>, vector<1x16x16xf32>
    %97 = vector.shape_cast %96 : vector<1x16x16xf32> to vector<16x16xf32>
    %c1_116 = arith.constant 1 : index
    %c5_117 = arith.constant 5 : index
    %c0_118 = arith.constant 0 : index
    %c0_119 = arith.constant 0 : index
    %98 = vector.load %arg1[%c1_116, %c5_117, %c0_118, %c0_119] : memref<2x7x16x16xf32, #tpu.memory_space<vmem>>, vector<1x1x16x16xf32>
    %99 = vector.shape_cast %98 : vector<1x1x16x16xf32> to vector<16x16xf32>
    %cst_120 = arith.constant dense<0.000000e+00> : vector<16x16xf32>
    %100 = tpu.matmul %97, %99, %cst_120 {dimension_numbers = #tpu.dot_dimension_numbers<[1], [0], [0], [1], [0, 0, 1, 1], [], []>} : vector<16x16xf32>, vector<16x16xf32>, vector<16x16xf32> -> vector<16x16xf32>
    %101 = arith.addf %95, %100 : vector<16x16xf32>
    %c1_121 = arith.constant 1 : index
    %c6_122 = arith.constant 6 : index
    %c0_123 = arith.constant 0 : index
    %102 = vector.load %arg4[%c1_121, %c6_122, %c0_123] : memref<2x22x16xf32, #tpu.memory_space<vmem>>, vector<1x16x16xf32>
    %103 = vector.shape_cast %102 : vector<1x16x16xf32> to vector<16x16xf32>
    %c1_124 = arith.constant 1 : index
    %c6_125 = arith.constant 6 : index
    %c0_126 = arith.constant 0 : index
    %c0_127 = arith.constant 0 : index
    %104 = vector.load %arg1[%c1_124, %c6_125, %c0_126, %c0_127] : memref<2x7x16x16xf32, #tpu.memory_space<vmem>>, vector<1x1x16x16xf32>
    %105 = vector.shape_cast %104 : vector<1x1x16x16xf32> to vector<16x16xf32>
    %cst_128 = arith.constant dense<0.000000e+00> : vector<16x16xf32>
    %106 = tpu.matmul %103, %105, %cst_128 {dimension_numbers = #tpu.dot_dimension_numbers<[1], [0], [0], [1], [0, 0, 1, 1], [], []>} : vector<16x16xf32>, vector<16x16xf32>, vector<16x16xf32> -> vector<16x16xf32>
    %107 = arith.addf %101, %106 : vector<16x16xf32>
    %108 = arith.negf %107 : vector<16x16xf32>
    %109 = math.exp %108 : vector<16x16xf32>
    %cst_129 = arith.constant 1.000000e+00 : f32
    %110 = vector.broadcast %cst_129 : f32 to vector<16x16xf32>
    %111 = arith.addf %110, %109 : vector<16x16xf32>
    %112 = arith.divf %110, %111 : vector<16x16xf32>
    %c0_130 = arith.constant 0 : index
    %c0_131 = arith.constant 0 : index
    %c0_132 = arith.constant 0 : index
    %c0_133 = arith.constant 0 : index
    %113 = vector.load %arg3[%c0_130, %c0_131, %c0_132, %c0_133] : memref<1x1x16x16xf32, #tpu.memory_space<vmem>>, vector<1x1x16x16xf32>
    %114 = vector.shape_cast %113 : vector<1x1x16x16xf32> to vector<16x16xf32>
    %115 = vector.shape_cast %112 : vector<16x16xf32> to vector<1x1x16x16xf32>
    tpu.vector_store %arg3[%c0_130, %c0_131, %c0_132, %c0_133], %115 {strides = array<i32>} : memref<1x1x16x16xf32, #tpu.memory_space<vmem>>, vector<1x1x16x16xf32>,
    return
  }
  func.func @transform_0(%arg0: i32) -> (i32, i32, i32, i32) {
    %c0_i32 = arith.constant 0 : i32
    %c0_i32_0 = arith.constant 0 : i32
    %c0_i32_1 = arith.constant 0 : i32
    %c0_i32_2 = arith.constant 0 : i32
    %c0_i32_3 = arith.constant 0 : i32
    return %c0_i32, %c0_i32_0, %c0_i32_1, %c0_i32_2 : i32, i32, i32, i32
  }
  func.func @transform_1(%arg0: i32) -> (i32, i32, i32, i32) {
    %c0_i32 = arith.constant 0 : i32
    %c0_i32_0 = arith.constant 0 : i32
    %c0_i32_1 = arith.constant 0 : i32
    %c0_i32_2 = arith.constant 0 : i32
    return %arg0, %c0_i32, %c0_i32_0, %c0_i32_1 : i32, i32, i32, i32
  }
  func.func @transform_2(%arg0: i32) -> (i32, i32, i32, i32) {
    %c0_i32 = arith.constant 0 : i32
    %c0_i32_0 = arith.constant 0 : i32
    %c0_i32_1 = arith.constant 0 : i32
    %c0_i32_2 = arith.constant 0 : i32
    return %arg0, %c0_i32, %c0_i32_0, %c0_i32_1 : i32, i32, i32, i32
  }
}

</mosaic_0001>

<bundles_post_ra>
// kernel: channel_attention.1
= control target key start
LH: loop header
LB: loop body
LE: loop exit
PB: predicated region body
PF: predicated region fallthrough
CT: control target
= control target key end

     0   :  { %7 = vsyncpa [#allocation4], 0  ;;  %s2264_s0 = inlined_call_operand.vmem [shape: f32[2,7,16,16], index: 0, kind: input, shape index: {}]   ;;  %s2265_s1 = inlined_call_operand.vmem [shape: f32[2,4,16,16], index: 1, kind: input, shape index: {}]   ;;  %s2266_s2 = inlined_call_operand.hbm [shape: f32[2,1,16,16], index: 2, kind: output, shape index: {}]  }
   0x1   :  { %9 = vsyncpa [#allocation4 + $0x1], 0  ;;  %s2029_s9 = smov 0   ;;  %s2031_s10 = smov 0  }
   0x2   :  { %s2033_s11 = smov 0   ;;  %s2035_s12 = smov 0  }
   0x3 LB: > { %s2050_s13 = sadd.s32 4294967295, %s1988_s12   ;;  %s1509_s14 = sadd.s32 4294967294, %s1988_s12   ;;  %s1988_s12 = sphi %s2035_s12, %s2272_s12   ;;  %s1984_s11 = sphi %s2033_s11, %s2271_s11   ;;  %s1980_s10 = sphi %s2031_s10, %s2270_s10   ;;  %s1976_s9 = sphi %s2029_s9, %s2269_s9  }
   0x4   : > { %s2054_s15 = sadd.s32 1, %s1988_s12   ;;  %s69_s16 = sadd.s32 1, %s1984_s11 }
   0x5   : > { %s66_s17 = ssub.s32 %s1988_s12, %s2054_s15  ;;  %p79_p0 = scmp.ne.s32.totalorder %s1984_s11, %s1980_s10 }
   0x6   : > { %p67_p1 = scmp.eq.s32.totalorder %s66_s17, 0  ;;  %p80_p2 = scmp.eq.s32.totalorder %s2050_s13, 1 }
   0x7   : > { %p85_p3 = scmp.ne.s32.totalorder %s1980_s10, %s1976_s9  ;;  %p86_p4 = scmp.eq.s32.totalorder %s1509_s14, 1 }
   0x8   : > { %s2065_s18 = scalar_select %p67_p1, %s1984_s11, %s69_s16  }
   0x9   : > { %p2067_p5 = por %p80_p2, %p79_p0  ;;  %p2071_p6 = por %p86_p4, %p85_p3 }
   0xa   : > { %p1512_p7 = scmp.ge.s32.totalorder %s1988_s12, 1  ;;  %p115_p8 = scmp.lt.s32.totalorder %s1988_s12, 3 }
   0xc   : > { %p116_p9 = pnand %p1512_p7, %p115_p8 }
   0xd   : > { %s134_s21 = sand.u32 (!%p116_p9), 1, %s1980_s10   ;;  %p137_p10 = scmp.lt.s32.totalorder (!%p116_p9), %s2050_s13, 1  ;;  %vm142_vm0 = vcmask (!%p116_p9), 124928   ;;  %v2010_v0 = vmov (!%p116_p9), 0.0  }
   0xe   : > { %119 = sbr.rel (%p116_p9) target bundleno = 346 (0x15a), region = 28  ;;  %s1513_s22 = sshll.u32 (!%p116_p9), %s134_s21, 4  ;;  %143 = vst.msk [vmem:[#allocation2] sm:$0x7] (!%p116_p9), %vm142_vm0, %v2010_v0  ;;  %144 = vst.msk [vmem:[#allocation2 + $0x13] sm:$0x7] (!%p116_p9), %vm142_vm0, %v2010_v0 }
   0xf   : > { %146 = vst.msk [vmem:[#allocation2 + $0x18] sm:$0x7] (!%p116_p9), %vm142_vm0, %v2010_v0  ;;  %147 = vst.msk [vmem:[#allocation2 + $0x2b] sm:$0x7] (!%p116_p9), %vm142_vm0, %v2010_v0  ;;  %s2089_s28 = scalar_lea.vmem (!%p116_p9), [#allocation3], %s1513_s22  ;;  %s2006_s29 = smov (!%p116_p9), 1  }
  0x15   : > { %s138_s23 = scalar_select %p137_p10, %s2050_s13, 1 }
  0x17   : > { %s1578_s24 = sshll.u32 %s138_s23, 6 }
  0x18   : > { %s2085_s27 = scalar_lea.vmem %s2265_s1, %s1578_s24 }
  0x19   : > { %v148_v1 = vld [vmem:[%s2085_s27] sm:$0xff]   ;;  %v149_v2 = vld [vmem:[%s2085_s27 + $0x8] sm:$0xff]  }
  0x1a   : > { %v1990_v3 = vmov %v149_v2   ;;  %v1994_v4 = vmov %v148_v1   ;;  %v1998_v5 = vmov %v149_v2   ;;  %v2002_v6 = vmov %v148_v1  }
  0x1b LB: >> { %s1516_s30 = sshll.u32 %s2008_s29, 4  ;;  %s155_s29 = sadd.s32 1, %s2008_s29   ;;  %s2008_s29 = sphi %s2006_s29, %s155_s29   ;;  %v2004_v6 = vphi %v2002_v6, %v2003_v6   ;;  %v2000_v5 = vphi %v1998_v5, %v1999_v5   ;;  %v1996_v4 = vphi %v1994_v4, %v1995_v4   ;;  %v1992_v3 = vphi %v1990_v3, %v1991_v3  }
  0x1c   : >> { %s161_s3 = scalar_lea.vmem %s2085_s27, %s1516_s30  ;;  %p152_p11 = scmp.ge.s32.totalorder %s155_s29, 4  }
  0x1d   : >> { %v162_v7 = vld [vmem:[%s161_s3] sm:$0xff]  ;;  %v163_v8 = vld [vmem:[%s161_s3 + $0x8] sm:$0xff]  ;;  %v1517_v13 = vld [vmem:[%s2264_s0 + $0x10] sm:$0xff] (%p152_p11)  ;;  %vm168_vm1 = vcmask (%p152_p11), 130048   ;;  %s1579_s14 = sshll.u32 (%p152_p11), %s2050_s13, 8  ;;  %s1428_s16 = sshll.u32 (%p152_p11), %s2089_s28, 4  ;;  %s2215_s16 = int_to_ptr.vmem [resolvable:$true] %s1428_s16 }
  0x1e   : >> { %v164_v9 = vadd.f32 %v2004_v6, %v162_v7   ;;  %v165_v10 = vadd.f32 %v2000_v5, %v163_v8   ;;  %v166_v11 = vmax.f32 %v1996_v4, %v162_v7   ;;  %v167_v12 = vmax.f32 %v1992_v3, %v163_v8   ;;  %154 = sbr.rel (!%p152_p11) target bundleno = 27 (0x1b), region = 85  ;;  %v1518_v14 = vld [vmem:[%s2264_s0 + $0x18] sm:$0xff] (%p152_p11)  ;;  %v1543_v15 = vld [vmem:[%s2264_s0 + $0x70] sm:$0xff] (%p152_p11)  ;;  %v175_v18 = vld [vmem:[%s2264_s0] sm:$0xff] (%p152_p11)  ;;  %s2213_s23 = scalar_lea.hbm (%p152_p11), %s2266_s2, %s1579_s14 }
  0x1f   : > { %v1734_v16 = vpack.c.bf16 (%p152_p11), %v1518_v14, %v1517_v13  ;;  %v1544_v17 = vld [vmem:[%s2264_s0 + $0x78] sm:$0xff] (%p152_p11)  ;;  %v176_v19 = vld [vmem:[%s2264_s0 + $0x8] sm:$0xff] (%p152_p11)  ;;  %v1547_v22 = vld [vmem:[%s2264_s0 + $0x80] sm:$0xff] (%p152_p11)  ;;  %s2223_s24 = scalar_lea.sflag (%p152_p11), [#allocation4], %s134_s21  ;;  %s1906_s13 = scalar_lea.vmem (%p152_p11), %s2215_s16, 256 }
  0x20   : >> { %v1991_v3 = vmov %v167_v12   ;;  %v1995_v4 = vmov %v166_v11   ;;  %v1999_v5 = vmov %v165_v10   ;;  %v2003_v6 = vmov %v164_v9   ;;  %169 = vst.msk [vmem:[#allocation2 + $0x3] sm:$0xff] (%p152_p11), %vm168_vm1, %v164_v9  ;;  %170 = vst.msk [vmem:[#allocation2 + $0xb] sm:$0xff] (%p152_p11), %vm168_vm1, %v165_v10  ;;  %v1548_v23 = vld [vmem:[%s2264_s0 + $0x88] sm:$0xff] (%p152_p11)  ;;  %v1523_v25 = vld [vmem:[%s2264_s0 + $0x20] sm:$0xff] (%p152_p11)  ;;  %p1907_p12 = scmp.ne.s32.totalorder (%p152_p11), %s2215_s16, %s1906_s13  ;;  %s2011_s25 = smov (%p152_p11), [#allocation3]  }
  0x21   : > { %171 = vst.msk [vmem:[#allocation2 + $0x1b] sm:$0xff] (%p152_p11), %vm168_vm1, %v166_v11  ;;  %172 = vst.msk [vmem:[#allocation2 + $0x23] sm:$0xff] (%p152_p11), %vm168_vm1, %v167_v12  ;;  %v1762_v20 = vpack.c.bf16 (%p152_p11), %v1544_v17, %v1543_v15  ;;  %v1738_v21 = vpack.c.bf16 (%p152_p11), %v176_v19, %v175_v18  ;;  %1735 = vmatprep.subr.bf16.mxu1 (%p152_p11), %v1734_v16  ;;  %v1766_v24 = vpack.c.bf16 (%p152_p11), %v1548_v23, %v1547_v22  ;;  %v1524_v26 = vld [vmem:[%s2264_s0 + $0x28] sm:$0xff] (%p152_p11)  ;;  %v1551_v27 = vld [vmem:[%s2264_s0 + $0x90] sm:$0xff] (%p152_p11)  ;;  %s1910_s26 = sshll.u32 (%p152_p11), %s2011_s25, 4  ;;  %s1911_s26 = int_to_ptr.vmem [resolvable:$false] %s1910_s26 }
  0x22   : > { %1737 = vmatpush3.bf16.msra.mxu1 (%p152_p11), %v1734_v16  ;;  %v1552_v28 = vld [vmem:[%s2264_s0 + $0x98] sm:$0xff] (%p152_p11)  ;;  %v1742_v32 = vpack.c.bf16 (%p152_p11), %v1524_v26, %v1523_v25  ;;  %v1527_v37 = vld [vmem:[%s2264_s0 + $0x30] sm:$0xff] (%p152_p11)  ;;  %v1555_v39 = vld [vmem:[%s2264_s0 + $0xa0] sm:$0xff] (%p152_p11)  ;;  %p1908_p13 = pnand (%p152_p11), %p1907_p12, %p2067_p5  ;;  %s1912_s27 = scalar_lea.vmem (%p152_p11), %s1911_s26, 512 }
  0x23   : > { %1763 = vmatprep.subr.bf16.mxu0 (%p152_p11), %v1762_v20  ;;  %1739 = vmatprep.subr.bf16.mxu1 (%p152_p11), %v1738_v21  ;;  %v1770_v35 = vpack.c.bf16 (%p152_p11), %v1552_v28, %v1551_v27  ;;  %v1528_v38 = vld [vmem:[%s2264_s0 + $0x38] sm:$0xff] (%p152_p11)  ;;  %v1556_v40 = vld [vmem:[%s2264_s0 + $0xa8] sm:$0xff] (%p152_p11)  ;;  %v1531_v47 = vld [vmem:[%s2264_s0 + $0x40] sm:$0xff] (%p152_p11)  ;;  %p1913_p1 = scmp.lt.s32.totalorder (%p152_p11), %s2215_s16, %s1911_s26  ;;  %p1914_p2 = scmp.lt.s32.totalorder (%p152_p11), %s1912_s27, %s1906_s13 }
  0x24   : > { %1765 = vmatpush3.bf16.msra.mxu0 (%p152_p11), %v1762_v20  ;;  %v1746_v43 = vpack.c.bf16 (%p152_p11), %v1528_v38, %v1527_v37  ;;  %v1774_v45 = vpack.c.bf16 (%p152_p11), %v1556_v40, %v1555_v39  ;;  %v1532_v48 = vld [vmem:[%s2264_s0 + $0x48] sm:$0xff] (%p152_p11)  ;;  %v1559_v49 = vld [vmem:[%s2264_s0 + $0xb0] sm:$0xff] (%p152_p11)  ;;  %v1560_v50 = vld [vmem:[%s2264_s0 + $0xb8] sm:$0xff] (%p152_p11)  ;;  %p1909_p0 = pneg (%p152_p11), %p1908_p13 }
  0x25   : > { %1767 = vmatprep.subr.bf16.mxu0 %v1766_v24  ;;  %v1750_v53 = vpack.c.bf16 %v1532_v48, %v1531_v47  ;;  %v1778_v55 = vpack.c.bf16 %v1560_v50, %v1559_v49  ;;  %v1535_v57 = vld [vmem:[%s2264_s0 + $0x50] sm:$0xff]  ;;  %v1536_v58 = vld [vmem:[%s2264_s0 + $0x58] sm:$0xff]  ;;  %v1563_v59 = vld [vmem:[%s2264_s0 + $0xc0] sm:$0xff]  ;;  %p1915_p3 = por %p1914_p2, %p1913_p1 }
  0x26   : > { %v1564_v60 = vld [vmem:[%s2264_s0 + $0xc8] sm:$0xff]  ;;  %v1754_v63 = vpack.c.bf16 %v1536_v58, %v1535_v57  ;;  %v1539_v3 = vld [vmem:[%s2264_s0 + $0x60] sm:$0xff]  ;;  %v1567_v5 = vld [vmem:[%s2264_s0 + $0xd0] sm:$0xff] }
  0x27   : > { %v177_v29 = vld [vmem:[#allocation2 + $0x1] sm:$0xff]  ;;  %v178_v31 = vld [vmem:[#allocation2 + $0x9] sm:$0xff]  ;;  %v1782_v1 = vpack.c.bf16 %v1564_v60, %v1563_v59  ;;  %v1568_v6 = vld [vmem:[%s2264_s0 + $0xd8] sm:$0xff]  ;;  %p1916_p4 = pnand %p1915_p3, %p1909_p0 }
  0x28   : > { %v784_v30 = vld [vmem:[#allocation2 + $0x18] sm:$0xff]  ;;  %1640 = vmatprep.mubr.msk.f32.mxu1 %vm168_vm1, %v177_v29  ;;  %v785_v33 = vld [vmem:[#allocation2 + $0x20] sm:$0xff]  ;;  %v174_v41 = vld [vmem:[#allocation2 + $0x8] sm:$0xff]  ;;  %v1786_v11 = vpack.c.bf16 %v1568_v6, %v1567_v5 }
  0x29   : > { %1689 = vmatprep.mubr.msk.f32.mxu0 %vm168_vm1, %v784_v30  ;;  %v173_v34 = vld [vmem:[#allocation2] sm:$0xff]  ;;  %1641 = vmatmul.mubr.msk.f32.vlgmr.msra.gmra.mrb[0].mxu1 %vm168_vm1, %v178_v31  ;;  %v345_v51 = vld [vmem:[#allocation2 + $0xa] sm:$0xff] }
  0x2a   : > { %1690 = vmatmul.mubr.msk.f32.vlgmr.msra.gmra.mrb[0].mxu0 %vm168_vm1, %v785_v33  ;;  %v872_v36 = vld [vmem:[#allocation2 + $0x19] sm:$0xff]  ;;  %1741 = vmatpush3.bf16.msra.mxu1 %v1738_v21  ;;  %v873_v42 = vld [vmem:[#allocation2 + $0x21] sm:$0xff]  ;;  %v433_v61 = vld [vmem:[#allocation2 + $0xb] sm:$0xff] }
  0x2b   : > { %1769 = vmatpush3.bf16.msra.mxu0 %v1766_v24  ;;  %1647 = vmatprep.mubr.msk.f32.mxu1 %vm168_vm1, %v173_v34  ;;  %v344_v44 = vld [vmem:[#allocation2 + $0x2] sm:$0xff]  ;;  %v960_v46 = vld [vmem:[#allocation2 + $0x1a] sm:$0xff]  ;;  %v521_v7 = vld [vmem:[#allocation2 + $0xc] sm:$0xff] }
  0x2c   : > { %1743 = vmatprep.subr.bf16.mxu1 %v1742_v32  ;;  %1696 = vmatprep.mubr.msk.f32.mxu0 %vm168_vm1, %v872_v36  ;;  %v961_v52 = vld [vmem:[#allocation2 + $0x22] sm:$0xff]  ;;  %v609_v13 = vld [vmem:[#allocation2 + $0xd] sm:$0xff] }
  0x2d   : > { %1771 = vmatprep.subr.bf16.mxu0 %v1770_v35  ;;  %v432_v54 = vld [vmem:[#allocation2 + $0x3] sm:$0xff]  ;;  %v1048_v56 = vld [vmem:[#allocation2 + $0x1b] sm:$0xff]  ;;  %v697_v17 = vld [vmem:[#allocation2 + $0xe] sm:$0xff] }
  0x2e   : > { %v1049_v62 = vld [vmem:[#allocation2 + $0x23] sm:$0xff] }
  0x2f   : > { %v520_v0 = vld [vmem:[#allocation2 + $0x4] sm:$0xff]  ;;  %v1136_v2 = vld [vmem:[#allocation2 + $0x1c] sm:$0xff] }
  0x30   : > { %v1540_v4 = vld [vmem:[%s2264_s0 + $0x68] sm:$0xff]  ;;  %v1224_v12 = vld [vmem:[#allocation2 + $0x1d] sm:$0xff] }
  0x31   : > { %1648 = vmatmul.mubr.msk.f32.vlgmr.msra.gmra.mrb[0].mxu1 %vm168_vm1, %v174_v41  ;;  %v1137_v8 = vld [vmem:[#allocation2 + $0x24] sm:$0xff]  ;;  %v1758_v9 = vpack.c.bf16 %v1540_v4, %v1539_v3 }
  0x32   : > { %1697 = vmatmul.mubr.msk.f32.vlgmr.msra.gmra.mrb[0].mxu0 %vm168_vm1, %v873_v42  ;;  %1745 = vmatpush3.bf16.msra.mxu1 %v1742_v32  ;;  %v608_v10 = vld [vmem:[#allocation2 + $0x5] sm:$0xff] }
  0x33   : > { %1773 = vmatpush3.bf16.msra.mxu0 %v1770_v35  ;;  %1654 = vmatprep.mubr.msk.f32.mxu1 %vm168_vm1, %v344_v44  ;;  %v1225_v14 = vld [vmem:[#allocation2 + $0x25] sm:$0xff] }
  0x34   : > { %1747 = vmatprep.subr.bf16.mxu1 %v1746_v43  ;;  %1703 = vmatprep.mubr.msk.f32.mxu0 %vm168_vm1, %v960_v46  ;;  %v696_v15 = vld [vmem:[#allocation2 + $0x6] sm:$0xff]  ;;  %v1312_v16 = vld [vmem:[#allocation2 + $0x1e] sm:$0xff] }
  0x35   : > { %1775 = vmatprep.subr.bf16.mxu0 %v1774_v45  ;;  %v1313_v18 = vld [vmem:[#allocation2 + $0x26] sm:$0xff] }
  0x39   : > { %1655 = vmatmul.mubr.msk.f32.vlgmr.msra.gmra.mrb[0].mxu1 %vm168_vm1, %v345_v51 }
  0x3a   : > { %1704 = vmatmul.mubr.msk.f32.vlgmr.msra.gmra.mrb[0].mxu0 %vm168_vm1, %v961_v52  ;;  %1749 = vmatpush3.bf16.msra.mxu1 %v1746_v43 }
  0x3b   : > { %1777 = vmatpush3.bf16.msra.mxu0 %v1774_v45  ;;  %1661 = vmatprep.mubr.msk.f32.mxu1 %vm168_vm1, %v432_v54 }
  0x3c   : > { %1751 = vmatprep.subr.bf16.mxu1 %v1750_v53  ;;  %1710 = vmatprep.mubr.msk.f32.mxu0 %vm168_vm1, %v1048_v56 }
  0x3d   : > { %1779 = vmatprep.subr.bf16.mxu0 %v1778_v55 }
  0x41   : > { %1662 = vmatmul.mubr.msk.f32.vlgmr.msra.gmra.mrb[0].mxu1 %vm168_vm1, %v433_v61 }
  0x42   : > { %1711 = vmatmul.mubr.msk.f32.vlgmr.msra.gmra.mrb[0].mxu0 %vm168_vm1, %v1049_v62  ;;  %1753 = vmatpush3.bf16.msra.mxu1 %v1750_v53 }
  0x43   : > { %1781 = vmatpush3.bf16.msra.mxu0 %v1778_v55  ;;  %1668 = vmatprep.mubr.msk.f32.mxu1 %vm168_vm1, %v520_v0 }
  0x44   : > { %1755 = vmatprep.subr.bf16.mxu1 %v1754_v63  ;;  %1717 = vmatprep.mubr.msk.f32.mxu0 %vm168_vm1, %v1136_v2 }
  0x45   : > { %1783 = vmatprep.subr.bf16.mxu0 %v1782_v1 }
  0x49   : > { %1669 = vmatmul.mubr.msk.f32.vlgmr.msra.gmra.mrb[0].mxu1 %vm168_vm1, %v521_v7 }
  0x4a   : > { %1718 = vmatmul.mubr.msk.f32.vlgmr.msra.gmra.mrb[0].mxu0 %vm168_vm1, %v1137_v8  ;;  %1757 = vmatpush3.bf16.msra.mxu1 %v1754_v63 }
  0x4b   : > { %1785 = vmatpush3.bf16.msra.mxu0 %v1782_v1  ;;  %1675 = vmatprep.mubr.msk.f32.mxu1 %vm168_vm1, %v608_v10 }
  0x4c   : > { %1759 = vmatprep.subr.bf16.mxu1 %v1758_v9  ;;  %1724 = vmatprep.mubr.msk.f32.mxu0 %vm168_vm1, %v1224_v12 }
  0x4d   : > { %1787 = vmatprep.subr.bf16.mxu0 %v1786_v11 }
  0x51   : > { %1676 = vmatmul.mubr.msk.f32.vlgmr.msra.gmra.mrb[0].mxu1 %vm168_vm1, %v609_v13 }
  0x52   : > { %1725 = vmatmul.mubr.msk.f32.vlgmr.msra.gmra.mrb[0].mxu0 %vm168_vm1, %v1225_v14  ;;  %1761 = vmatpush3.bf16.msra.mxu1 %v1758_v9 }
  0x53   : > { %1789 = vmatpush3.bf16.msra.mxu0 %v1786_v11  ;;  %1682 = vmatprep.mubr.msk.f32.mxu1 %vm168_vm1, %v696_v15 }
  0x54   : > { %1731 = vmatprep.mubr.msk.f32.mxu0 %vm168_vm1, %v1312_v16 }
  0x59   : > { %1683 = vmatmul.mubr.msk.f32.vlgmr.msra.gmra.mrb[0].mxu1 %vm168_vm1, %v697_v17 }
  0x5a   : > { %1732 = vmatmul.mubr.msk.f32.vlgmr.msra.gmra.mrb[0].mxu0 %vm168_vm1, %v1313_v18 }
 0x12c   : > { %v1684_v19 = vpop.f32.mrb[0].mxu1 }
 0x12d   : > { %v1733_v20 = vpop.f32.mrb[0].mxu0  ;;  %v773_v22 = vpop.f32.mrb[1].mxu1 }
 0x12e   : > { %v1790_v21 = vadd.f32 %v1733_v20, %v1684_v19  ;;  %v1389_v23 = vpop.f32.mrb[1].mxu0 }
 0x12f   : > { %v1791_v24 = vadd.f32 %v1389_v23, %v773_v22 }
 0x130   : > { %v1572_v25 = vmul.f32 -1.442695, %v1790_v21 }
 0x131   : > { %v1571_v26 = vmul.f32 -1.442695, %v1791_v24 }
 0x132   : > { %1898 = vpow2.f32 %v1572_v25 }
 0x133   : > { %1900 = vpow2.f32 %v1571_v26 }
 0x13c   : > { %v1899_v27 = vpop.eup %1898 }
 0x13d   : > { %v1901_v28 = vpop.eup %1900  ;;  %v1407_v29 = vadd.f32 1.0, %v1899_v27 }
 0x13e   : > { %v1406_v30 = vadd.f32 1.0, %v1901_v28 }
 0x13f   : > { %1902 = vrcp.f32 %v1407_v29 }
 0x140   : > { %1904 = vrcp.f32 %v1406_v30 }
 0x149   : > { %v1903_v31 = vpop.eup %1902 }
 0x14a   : > { %v1905_v32 = vpop.eup %1904  ;;  %1413 = vst.msk [vmem:[%s2089_s28 + $0x8] sm:$0xff] %vm168_vm1, %v1903_v31 }
 0x14b   : > { %1412 = vst.msk [vmem:[%s2089_s28] sm:$0xff] %vm168_vm1, %v1905_v32 }
 0x14c   : > { %1919 = shalt.err (!%p1916_p4)
}
 0x14d   : > { %s1920_s21 = scalar_lea.hbm %s2213_s23, 256  ;;  %s1924_s30 = scalar_lea.hbm %s2266_s2, 512 }
 0x14e   : > { %p1921_p7 = scmp.ne.s32.totalorder %s2213_s23, %s1920_s21  ;;  %p1925_p10 = scmp.lt.u32.totalorder %s2213_s23, %s2266_s2 }
 0x14f   : > { %p1926_p11 = scmp.lt.u32.totalorder %s1924_s30, %s1920_s21  ;;  %p1928_p13 = scmp.lt.u32.totalorder %s1920_s21, %s2213_s23 }
 0x150   : > { %p1922_p8 = pnand %p1921_p7, %p2067_p5 }
 0x151   : > { %p1927_p12 = por %p1926_p11, %p1925_p10 }
 0x152   : > { %p1923_p9 = pneg %p1922_p8 }
 0x153   : > { %p1929_p0 = por %p1928_p13, %p1927_p12 }
 0x155   : > { %p1930_p1 = pnand %p1929_p0, %p1923_p9 }
 0x157   : > { %1933 = shalt.err (!%p1930_p1)
}
 0x158   : > { %s2012_s5 = smov 128   ;;  %s2013_s6 = smov 8  }
 0x159   : > { %1816 = dma.vmem_to_hbm [thread:$0]  (%p2067_p5), %s2215_s16, 256, %s2213_s23, %s2223_s24, %s2012_s5, %s2012_s5, %s2013_s6  }
 0x15a PF: > { %p1822_p2 = scmp.ge.s32.totalorder %s1988_s12, 2  ;;  %s1443_s7 = sand.u32 1, %s1976_s9  }
 0x15b   : > { %s1444_s8 = scalar_lea.sflag [#allocation4], %s1443_s7 }
 0x15c   : > { %p1819_p3 = pnand %p1822_p2, %p2071_p6 }
 0x15e   : > { %1971 = dma.done.wait (!%p1819_p3), %s1444_s8, 256  }
 0x15f   : > { %1973 = vsyncadd (!%p1819_p3), %s1444_s8, 4294967040  ;;  %p12_p4 = scmp.ge.s32.totalorder %s2054_s15, 4   ;;  %s2269_s9 = smov %s1980_s10 }
 0x160   : > { %s2270_s10 = smov %s1984_s11  ;;  %s2271_s11 = smov %s2065_s18 }
 0x161   : > { %s2272_s12 = smov %s2054_s15  ;;  %14 = sbr.rel (!%p12_p4) target bundleno = 3 (0x3), region = 96 }
 0x168   :  { %1449 = vsyncpa [#allocation4], 1 }
 0x169   :  { %1451 = vsyncpa [#allocation4 + $0x1], 1 }

</bundles_post_ra>
